<compile_context>
chip_gen: v5e
topology: v5e:2x2
jax: 0.10.0
libtpu: 0.0.40
codegen_flags: <defaults>
</compile_context>

<pallas_src>
import functools

import jax
import jax.numpy as jnp
from jax import lax
from jax.experimental import pallas as pl
from jax.experimental.pallas import tpu as pltpu


def _fused_dense_block_kernel(x_ref, m1_ref, m2_ref, w1_ref, b1_ref,
                              w2_ref, b2_ref, o_ref, *, W):
    """One batch tile (NB images folded onto lanes) of DenseBlock, fully fused.

    x_ref  : (1, C, L)       input; channels on sublanes, L = NB*H*W on lanes
    m1_ref : (9*C, L)        0/1 zero-padding masks for conv1's im2col rows
    m2_ref : (9*(C//2), L)   0/1 zero-padding masks for conv2's im2col rows
    w1_ref : (C//2, 9*C)     conv1 weights (BN scale folded), K = tap*Cin + ci
    b1_ref : (C//2, 1)       conv1 folded BN bias
    w2_ref : (C, 9*(C//2))   conv2 weights (BN scale folded)
    b2_ref : (C, 1)          conv2 folded BN bias
    o_ref  : (1, 2*C, L)     output = concat([x, x + relu(bn(conv2(h1)))], C)
    """
    L = x_ref.shape[-1]
    x = x_ref[0]                                          # (C, L)

    def im2col(v):
        # Row t*Cv + ci of the result holds tap t (= ky*3 + kx) of channel ci:
        # an XLU lane-rotate of the flattened spatial axis by -(oy*W + ox).
        # Row-wrap / cross-image / out-of-image positions are zeroed by the
        # precomputed masks (reproducing the padding=1 zero-pad semantics).
        taps = []
        for ky in range(3):
            for kx in range(3):
                d = (ky - 1) * W + (kx - 1)               # flat spatial offset
                if d == 0:
                    taps.append(v)
                else:
                    taps.append(pltpu.roll(v, shift=(-d) % L, axis=1))
        return jnp.concatenate(taps, axis=0)              # (9*Cv, L), in vregs

    # conv1 (3x3, pad=1) + folded BN + ReLU -> h1: (C//2, L), stays in vregs.
    h1 = jnp.maximum(
        jnp.dot(w1_ref[...], im2col(x) * m1_ref[...],
                preferred_element_type=jnp.float32) + b1_ref[...],
        0.0)

    # conv2 (3x3, pad=1) + folded BN + ReLU -> h2: (C, L)
    h2 = jnp.maximum(
        jnp.dot(w2_ref[...], im2col(h1) * m2_ref[...],
                preferred_element_type=jnp.float32) + b2_ref[...],
        0.0)

    # DenseBlock output: concat([x, x + h2]) along channels, written with one
    # full (2C x L) unmasked store (fused concat + residual add).
    o_ref[0] = jnp.concatenate([x, x + h2], axis=0).astype(o_ref.dtype)


def _tap_masks(H, W):
    """(9, H*W) 0/1 masks implementing the zero padding of a 3x3 / pad=1 conv
    when the spatial dims are flattened onto a single (lane) axis."""
    yy, xx = jnp.meshgrid(jnp.arange(H), jnp.arange(W), indexing="ij")
    yy = yy.reshape(1, H * W)
    xx = xx.reshape(1, H * W)
    rows = []
    for ky in range(3):
        for kx in range(3):
            oy, ox = ky - 1, kx - 1
            valid = ((yy + oy >= 0) & (yy + oy < H) &
                     (xx + ox >= 0) & (xx + ox < W))
            rows.append(valid.astype(jnp.float32))
    return jnp.concatenate(rows, axis=0)


def _pick_batch_tiles(N):
    """Single-TC chips (v5e/v6e): fold the whole batch into one grid step.
    Dual-TC v7x: keep 2 'parallel' grid steps so both TensorCores have work."""
    try:
        kind = jax.devices()[0].device_kind.lower()
        if "v7" in kind or "tpu7" in kind:
            return min(2, N)
    except Exception:
        pass
    return 1


@functools.partial(jax.jit, static_argnames=("batch_tiles",))
def _dense_block_pallas(x_nchw, w1eff, b1, w2eff, b2, *, batch_tiles):
    N, C, H, W = x_nchw.shape
    HW = H * W
    NB = N // batch_tiles
    L = NB * HW                                   # lane extent per grid step
    c_mid = w1eff.shape[0]

    # Lane-dense layout: channels on sublanes, NB images flattened onto lanes
    # (image-major).  Cheap wrapper-side layout plumbing only.
    x_t = (x_nchw.reshape(batch_tiles, NB, C, HW)
           .transpose(0, 2, 1, 3)
           .reshape(batch_tiles, C, L))

    # Zero-padding masks, tiled over the NB folded images and expanded to the
    # im2col row layout (K index = tap*Cin + ci).  Constant-folded under jit.
    m9 = jnp.tile(_tap_masks(H, W), (1, NB))      # (9, L)
    mask1 = jnp.repeat(m9, C, axis=0)             # (9*C, L)
    mask2 = jnp.repeat(m9, c_mid, axis=0)         # (9*c_mid, L)

    kernel = functools.partial(_fused_dense_block_kernel, W=W)
    out = pl.pallas_call(
        kernel,
        out_shape=jax.ShapeDtypeStruct((batch_tiles, 2 * C, L), jnp.float32),
        grid_spec=pltpu.PrefetchScalarGridSpec(
            num_scalar_prefetch=0,
            grid=(batch_tiles,),
            in_specs=[
                pl.BlockSpec((1, C, L), lambda t: (t, 0, 0)),
                pl.BlockSpec((9 * C, L), lambda t: (0, 0)),
                pl.BlockSpec((9 * c_mid, L), lambda t: (0, 0)),
                pl.BlockSpec((c_mid, 9 * C), lambda t: (0, 0)),
                pl.BlockSpec((c_mid, 1), lambda t: (0, 0)),
                pl.BlockSpec((C, 9 * c_mid), lambda t: (0, 0)),
                pl.BlockSpec((C, 1), lambda t: (0, 0)),
            ],
            out_specs=pl.BlockSpec((1, 2 * C, L), lambda t: (t, 0, 0)),
        ),
        compiler_params=pltpu.CompilerParams(
            dimension_semantics=("parallel",),
        ),
    )(x_t, mask1, mask2, w1eff, b1, w2eff, b2)

    return (out.reshape(batch_tiles, 2 * C, NB, HW)
            .transpose(0, 2, 1, 3)
            .reshape(N, 2 * C, H, W))


def dense_block_forward(x_nchw, w1eff, b1, w2eff, b2):
    """DenseBlock: h = x + CBR2(CBR1(x)); return concat([x, h], channel axis)."""
    N = x_nchw.shape[0]
    batch_tiles = _pick_batch_tiles(N)
    if N % batch_tiles != 0:
        batch_tiles = 1
    return _dense_block_pallas(x_nchw, w1eff, b1, w2eff, b2,
                               batch_tiles=batch_tiles)


def init_dense_block_params(key, in_channels):
    """Deterministic params.  BN (inference) folded for the kernel path:
    scale = gamma/sqrt(var+eps) is folded into the conv weights; bias =
    beta - mean*scale is kept as a (Cout, 1) column."""
    c_in, c_mid = in_channels, in_channels // 2
    eps = 1e-5
    k1, k2, k3, k4 = jax.random.split(key, 4)

    def make(kw, kb, cin, cout):
        w = jax.random.normal(kw, (3, 3, cin, cout), jnp.float32) * 0.1  # HWIO
        gamma = 1.0 + 0.1 * jax.random.normal(kb, (cout,), jnp.float32)
        beta = 0.05 * jnp.arange(cout, dtype=jnp.float32)
        running_mean = jnp.zeros((cout,), jnp.float32)
        running_var = jnp.ones((cout,), jnp.float32)
        scale = gamma / jnp.sqrt(running_var + eps)
        bias = beta - running_mean * scale
        # Fold BN scale into the conv weights and flatten to the (Cout, 9*Cin)
        # layout used by the kernel: K index = (ky*3 + kx)*Cin + ci, matching
        # the in-kernel im2col row order.
        weff = jnp.transpose(w * scale[None, None, None, :],
                             (3, 0, 1, 2)).reshape(cout, 9 * cin)
        return dict(weff=weff, bcol=bias[:, None],
                    w_hwio=w, scale=scale, bias=bias)

    p1 = make(k1, k2, c_in, c_mid)
    p2 = make(k3, k4, c_mid, c_in)
    return dict(
        w1eff=p1["weff"], b1=p1["bcol"], w2eff=p2["weff"], b2=p2["bcol"],
        # raw params for the pure-JAX reference
        w1_hwio=p1["w_hwio"], s1=p1["scale"], b1_vec=p1["bias"],
        w2_hwio=p2["w_hwio"], s2=p2["scale"], b2_vec=p2["bias"],
    )


def _reference(x_nchw, params):
    """Pure-JAX reference (lax.conv, NCHW) for the correctness check."""
    dn = ("NCHW", "HWIO", "NCHW")

    def cbr(v, w_hwio, scale, bias):
        y = lax.conv_general_dilated(v, w_hwio, (1, 1), ((1, 1), (1, 1)),
                                     dimension_numbers=dn)
        y = y * scale[None, :, None, None] + bias[None, :, None, None]
        return jnp.maximum(y, 0.0)

    h1 = cbr(x_nchw, params["w1_hwio"], params["s1"], params["b1_vec"])
    h = x_nchw + cbr(h1, params["w2_hwio"], params["s2"], params["b2_vec"])
    return jnp.concatenate([x_nchw, h], axis=1)


if __name__ == "__main__":
    key = jax.random.PRNGKey(0)
    kx, kp = jax.random.split(key)

    N, C, H, W = 2, 4, 16, 16
    x = jax.random.normal(kx, (N, C, H, W), jnp.float32)
    params = init_dense_block_params(kp, C)

    out = dense_block_forward(x, params["w1eff"], params["b1"],
                              params["w2eff"], params["b2"])
    out = jax.block_until_ready(out)
    assert out.shape == (N, 2 * C, H, W), out.shape

    ref = jax.block_until_ready(_reference(x, params))
    if not jnp.allclose(out, ref, atol=1e-4, rtol=1e-4):
        max_err = jnp.max(jnp.abs(out - ref))
        raise AssertionError(
            f"Pallas DenseBlock output mismatch vs JAX reference (max err={max_err})")

    print("KERNEL_OK")
</pallas_src>

<mosaic_0001>
module attributes {stable_mosaic.version = 11 : i64} {
  func.func @_fused_dense_block_kernel(%arg0: i32, %arg1: memref<1x4x512xf32, #tpu.memory_space<vmem>>, %arg2: memref<36x512xf32, #tpu.memory_space<vmem>>, %arg3: memref<18x512xf32, #tpu.memory_space<vmem>>, %arg4: memref<2x36xf32, #tpu.memory_space<vmem>>, %arg5: memref<2x1xf32, #tpu.memory_space<vmem>>, %arg6: memref<4x18xf32, #tpu.memory_space<vmem>>, %arg7: memref<4x1xf32, #tpu.memory_space<vmem>>, %arg8: memref<1x8x512xf32, #tpu.memory_space<vmem>>) attributes {dimension_semantics = [#tpu.dimension_semantics<parallel>], iteration_bounds = array<i64: 1>, scalar_prefetch = 0 : i64, scratch_operands = 0 : i64, tpu.core_type = #tpu.core_type<tc>, window_params = [{transform_indices = @transform_0, window_bounds = array<i64: 1, 4, 512>}, {pipeline_mode = #tpu.pipeline_mode<synchronous>, transform_indices = @transform_1, window_bounds = array<i64: 36, 512>}, {pipeline_mode = #tpu.pipeline_mode<synchronous>, transform_indices = @transform_2, window_bounds = array<i64: 18, 512>}, {pipeline_mode = #tpu.pipeline_mode<synchronous>, transform_indices = @transform_3, window_bounds = array<i64: 2, 36>}, {pipeline_mode = #tpu.pipeline_mode<synchronous>, transform_indices = @transform_4, window_bounds = array<i64: 2, 1>}, {pipeline_mode = #tpu.pipeline_mode<synchronous>, transform_indices = @transform_5, window_bounds = array<i64: 4, 18>}, {pipeline_mode = #tpu.pipeline_mode<synchronous>, transform_indices = @transform_6, window_bounds = array<i64: 4, 1>}, {transform_indices = @transform_7, window_bounds = array<i64: 1, 8, 512>}]} {
    %c0 = arith.constant 0 : index
    %c0_0 = arith.constant 0 : index
    %c0_1 = arith.constant 0 : index
    %0 = vector.load %arg1[%c0, %c0_0, %c0_1] : memref<1x4x512xf32, #tpu.memory_space<vmem>>, vector<1x4x512xf32>
    %1 = vector.shape_cast %0 : vector<1x4x512xf32> to vector<4x512xf32>
    %c0_2 = arith.constant 0 : index
    %c0_3 = arith.constant 0 : index
    %2 = vector.load %arg4[%c0_2, %c0_3] : memref<2x36xf32, #tpu.memory_space<vmem>>, vector<2x36xf32>
    %c17_i32 = arith.constant 17 : i32
    %3 = tpu.dynamic_rotate %1 by %c17_i32 dim 1 : vector<4x512xf32>, i32 -> vector<4x512xf32>
    %c16_i32 = arith.constant 16 : i32
    %4 = tpu.dynamic_rotate %1 by %c16_i32 dim 1 : vector<4x512xf32>, i32 -> vector<4x512xf32>
    %c15_i32 = arith.constant 15 : i32
    %5 = tpu.dynamic_rotate %1 by %c15_i32 dim 1 : vector<4x512xf32>, i32 -> vector<4x512xf32>
    %c1_i32 = arith.constant 1 : i32
    %6 = tpu.dynamic_rotate %1 by %c1_i32 dim 1 : vector<4x512xf32>, i32 -> vector<4x512xf32>
    %c511_i32 = arith.constant 511 : i32
    %7 = tpu.dynamic_rotate %1 by %c511_i32 dim 1 : vector<4x512xf32>, i32 -> vector<4x512xf32>
    %c497_i32 = arith.constant 497 : i32
    %8 = tpu.dynamic_rotate %1 by %c497_i32 dim 1 : vector<4x512xf32>, i32 -> vector<4x512xf32>
    %c496_i32 = arith.constant 496 : i32
    %9 = tpu.dynamic_rotate %1 by %c496_i32 dim 1 : vector<4x512xf32>, i32 -> vector<4x512xf32>
    %c495_i32 = arith.constant 495 : i32
    %10 = tpu.dynamic_rotate %1 by %c495_i32 dim 1 : vector<4x512xf32>, i32 -> vector<4x512xf32>
    %11 = tpu.concatenate %3, %4, %5, %6, %1, %7, %8, %9, %10 in 0 : vector<4x512xf32>, vector<4x512xf32>, vector<4x512xf32>, vector<4x512xf32>, vector<4x512xf32>, vector<4x512xf32>, vector<4x512xf32>, vector<4x512xf32>, vector<4x512xf32> -> vector<36x512xf32>
    %c0_4 = arith.constant 0 : index
    %c0_5 = arith.constant 0 : index
    %12 = vector.load %arg2[%c0_4, %c0_5] : memref<36x512xf32, #tpu.memory_space<vmem>>, vector<36x512xf32>
    %13 = arith.mulf %11, %12 : vector<36x512xf32>
    %cst = arith.constant dense<0.000000e+00> : vector<2x512xf32>
    %14 = tpu.matmul %2, %13, %cst {dimension_numbers = #tpu.dot_dimension_numbers<[1], [0], [0], [1], [0, 0, 1, 1], [], []>} : vector<2x36xf32>, vector<36x512xf32>, vector<2x512xf32> -> vector<2x512xf32>
    %c0_6 = arith.constant 0 : index
    %c0_7 = arith.constant 0 : index
    %15 = vector.load %arg5[%c0_6, %c0_7] : memref<2x1xf32, #tpu.memory_space<vmem>>, vector<2x1xf32>
    %16 = vector.broadcast %15 : vector<2x1xf32> to vector<2x512xf32>
    %17 = arith.addf %14, %16 : vector<2x512xf32>
    %cst_8 = arith.constant 0.000000e+00 : f32
    %18 = vector.broadcast %cst_8 : f32 to vector<2x512xf32>
    %19 = arith.maximumf %17, %18 : vector<2x512xf32>
    %c0_9 = arith.constant 0 : index
    %c0_10 = arith.constant 0 : index
    %20 = vector.load %arg6[%c0_9, %c0_10] : memref<4x18xf32, #tpu.memory_space<vmem>>, vector<4x18xf32>
    %c17_i32_11 = arith.constant 17 : i32
    %21 = tpu.dynamic_rotate %19 by %c17_i32_11 dim 1 : vector<2x512xf32>, i32 -> vector<2x512xf32>
    %c16_i32_12 = arith.constant 16 : i32
    %22 = tpu.dynamic_rotate %19 by %c16_i32_12 dim 1 : vector<2x512xf32>, i32 -> vector<2x512xf32>
    %c15_i32_13 = arith.constant 15 : i32
    %23 = tpu.dynamic_rotate %19 by %c15_i32_13 dim 1 : vector<2x512xf32>, i32 -> vector<2x512xf32>
    %c1_i32_14 = arith.constant 1 : i32
    %24 = tpu.dynamic_rotate %19 by %c1_i32_14 dim 1 : vector<2x512xf32>, i32 -> vector<2x512xf32>
    %c511_i32_15 = arith.constant 511 : i32
    %25 = tpu.dynamic_rotate %19 by %c511_i32_15 dim 1 : vector<2x512xf32>, i32 -> vector<2x512xf32>
    %c497_i32_16 = arith.constant 497 : i32
    %26 = tpu.dynamic_rotate %19 by %c497_i32_16 dim 1 : vector<2x512xf32>, i32 -> vector<2x512xf32>
    %c496_i32_17 = arith.constant 496 : i32
    %27 = tpu.dynamic_rotate %19 by %c496_i32_17 dim 1 : vector<2x512xf32>, i32 -> vector<2x512xf32>
    %c495_i32_18 = arith.constant 495 : i32
    %28 = tpu.dynamic_rotate %19 by %c495_i32_18 dim 1 : vector<2x512xf32>, i32 -> vector<2x512xf32>
    %29 = tpu.concatenate %21, %22, %23, %24, %19, %25, %26, %27, %28 in 0 : vector<2x512xf32>, vector<2x512xf32>, vector<2x512xf32>, vector<2x512xf32>, vector<2x512xf32>, vector<2x512xf32>, vector<2x512xf32>, vector<2x512xf32>, vector<2x512xf32> -> vector<18x512xf32>
    %c0_19 = arith.constant 0 : index
    %c0_20 = arith.constant 0 : index
    %30 = vector.load %arg3[%c0_19, %c0_20] : memref<18x512xf32, #tpu.memory_space<vmem>>, vector<18x512xf32>
    %31 = arith.mulf %29, %30 : vector<18x512xf32>
    %cst_21 = arith.constant dense<0.000000e+00> : vector<4x512xf32>
    %32 = tpu.matmul %20, %31, %cst_21 {dimension_numbers = #tpu.dot_dimension_numbers<[1], [0], [0], [1], [0, 0, 1, 1], [], []>} : vector<4x18xf32>, vector<18x512xf32>, vector<4x512xf32> -> vector<4x512xf32>
    %c0_22 = arith.constant 0 : index
    %c0_23 = arith.constant 0 : index
    %33 = vector.load %arg7[%c0_22, %c0_23] : memref<4x1xf32, #tpu.memory_space<vmem>>, vector<4x1xf32>
    %34 = vector.broadcast %33 : vector<4x1xf32> to vector<4x512xf32>
    %35 = arith.addf %32, %34 : vector<4x512xf32>
    %cst_24 = arith.constant 0.000000e+00 : f32
    %36 = vector.broadcast %cst_24 : f32 to vector<4x512xf32>
    %37 = arith.maximumf %35, %36 : vector<4x512xf32>
    %38 = arith.addf %1, %37 : vector<4x512xf32>
    %39 = tpu.concatenate %1, %38 in 0 : vector<4x512xf32>, vector<4x512xf32> -> vector<8x512xf32>
    %c0_25 = arith.constant 0 : index
    %c0_26 = arith.constant 0 : index
    %c0_27 = arith.constant 0 : index
    %40 = vector.load %arg8[%c0_25, %c0_26, %c0_27] : memref<1x8x512xf32, #tpu.memory_space<vmem>>, vector<1x8x512xf32>
    %41 = vector.shape_cast %40 : vector<1x8x512xf32> to vector<8x512xf32>
    %42 = vector.shape_cast %39 : vector<8x512xf32> to vector<1x8x512xf32>
    tpu.vector_store %arg8[%c0_25, %c0_26, %c0_27], %42 {strides = array<i32>} : memref<1x8x512xf32, #tpu.memory_space<vmem>>, vector<1x8x512xf32>,
    return
  }
  func.func @transform_0(%arg0: i32) -> (i32, i32, i32) {
    %c0_i32 = arith.constant 0 : i32
    %c0_i32_0 = arith.constant 0 : i32
    %c0_i32_1 = arith.constant 0 : i32
    return %arg0, %c0_i32, %c0_i32_0 : i32, i32, i32
  }
  func.func @transform_1(%arg0: i32) -> (i32, i32) {
    %c0_i32 = arith.constant 0 : i32
    %c0_i32_0 = arith.constant 0 : i32
    %c0_i32_1 = arith.constant 0 : i32
    return %c0_i32, %c0_i32_0 : i32, i32
  }
  func.func @transform_2(%arg0: i32) -> (i32, i32) {
    %c0_i32 = arith.constant 0 : i32
    %c0_i32_0 = arith.constant 0 : i32
    %c0_i32_1 = arith.constant 0 : i32
    return %c0_i32, %c0_i32_0 : i32, i32
  }
  func.func @transform_3(%arg0: i32) -> (i32, i32) {
    %c0_i32 = arith.constant 0 : i32
    %c0_i32_0 = arith.constant 0 : i32
    %c0_i32_1 = arith.constant 0 : i32
    return %c0_i32, %c0_i32_0 : i32, i32
  }
  func.func @transform_4(%arg0: i32) -> (i32, i32) {
    %c0_i32 = arith.constant 0 : i32
    %c0_i32_0 = arith.constant 0 : i32
    %c0_i32_1 = arith.constant 0 : i32
    return %c0_i32, %c0_i32_0 : i32, i32
  }
  func.func @transform_5(%arg0: i32) -> (i32, i32) {
    %c0_i32 = arith.constant 0 : i32
    %c0_i32_0 = arith.constant 0 : i32
    %c0_i32_1 = arith.constant 0 : i32
    return %c0_i32, %c0_i32_0 : i32, i32
  }
  func.func @transform_6(%arg0: i32) -> (i32, i32) {
    %c0_i32 = arith.constant 0 : i32
    %c0_i32_0 = arith.constant 0 : i32
    %c0_i32_1 = arith.constant 0 : i32
    return %c0_i32, %c0_i32_0 : i32, i32
  }
  func.func @transform_7(%arg0: i32) -> (i32, i32, i32) {
    %c0_i32 = arith.constant 0 : i32
    %c0_i32_0 = arith.constant 0 : i32
    %c0_i32_1 = arith.constant 0 : i32
    return %arg0, %c0_i32, %c0_i32_0 : i32, i32, i32
  }
}

</mosaic_0001>

<bundles_post_ra>
// kernel: _dense_block_pallas.1
= control target key start
LH: loop header
LB: loop body
LE: loop exit
PB: predicated region body
PF: predicated region fallthrough
CT: control target
= control target key end

     0   :  { %s848_s28 = smov 17   ;;  %s850_s29 = smov 15   ;;  %v50_v35 = vlaneseq  ;;  %vm284_vm6 = vcmask 1043456   ;;  %vm347_vm9 = vcmask 293888   ;;  %vm616_vm10 = vcmask 1041408   ;;  %s1515_s0 = inlined_call_operand.vmem [shape: f32[1,4,512], index: 0, kind: input, shape index: {}]   ;;  %s1516_s4 = inlined_call_operand.vmem [shape: f32[2,1], index: 4, kind: input, shape index: {}]   ;;  %s1517_s1 = inlined_call_operand.vmem [shape: f32[36,512], index: 1, kind: input, shape index: {}]   ;;  %s1518_s3 = inlined_call_operand.vmem [shape: f32[2,36], index: 3, kind: input, shape index: {}]   ;;  %s1519_s6 = inlined_call_operand.vmem [shape: f32[4,1], index: 6, kind: input, shape index: {}]   ;;  %s1520_s2 = inlined_call_operand.vmem [shape: f32[18,512], index: 2, kind: input, shape index: {}]   ;;  %s1521_s5 = inlined_call_operand.vmem [shape: f32[4,18], index: 5, kind: input, shape index: {}]   ;;  %s1522_s7 = inlined_call_operand.vmem [shape: f32[1,8,512], index: 7, kind: output, shape index: {}]  }
   0x1   :  { %v900_v0 = vld [vmem:[%s1515_s0 + $0x8] sm:$0xff]  ;;  %v905_v1 = vld [vmem:[%s1515_s0] sm:$0xff]  ;;  %s849_s0 = smov 16   ;;  %s851_s30 = smov 1   ;;  %vm625_vm11 = vcmask 1045504   ;;  %vm672_vm12 = vcmask 146432  }
   0x2   :  { %33 = vst [vmem:[#allocation1 + $0x10] ss:$2 sm:$0xff] %v900_v0  ;;  %s852_s8 = smov 127   ;;  %s853_s9 = smov 113   ;;  %v966_v36 = vand.u32 127, %v50_v35 }
   0x3   :  { %31 = vst [vmem:[#allocation1] ss:$2 sm:$0xff] %v905_v1  ;;  %s854_s10 = smov 112   ;;  %s855_s11 = smov 111  }
   0x4   :  { %vm76_vm0 = vcmp.lt.s32.totalorder %v966_v36, 16  ;;  %vm196_vm1 = vcmp.lt.s32.totalorder %v966_v36, 112  ;;  %vm148_vm2 = vcmp.lt.s32.totalorder %v966_v36, 127  ;;  %vm172_vm3 = vcmp.lt.s32.totalorder %v966_v36, 113 }
   0x5   :  { %vm220_vm4 = vcmp.lt.s32.totalorder %v966_v36, 111  ;;  %vm124_vm5 = vcmp.lt.s32.totalorder %v966_v36, 1  ;;  %vm100_vm7 = vcmp.lt.s32.totalorder %v966_v36, 15  ;;  %vm52_vm8 = vcmp.lt.s32.totalorder %v966_v36, 17 }
   0x9   :  { %v36_v2 = vld.sshfl [vmem:[#allocation1 + $0x10] sm:$0xff pattern:$0x75316420]  ;;  %v37_v3 = vld.sshfl [vmem:[#allocation1 + $0x18] sm:$0xff pattern:$0x75316420] }
   0xa   :  { %46 = vrot.lane.b32.xlu0 %v36_v2, %s848_s28  ;;  %48 = vrot.lane.b32.xlu1 %v37_v3, %s848_s28  ;;  %59 = vst [vmem:[#allocation1 + $0x10] ss:$2 sm:$0xff] %v900_v0  ;;  %v912_v4 = vld.sshfl [vmem:[#allocation1] sm:$0xff pattern:$0x75316420] }
   0xb   :  { %v914_v5 = vld.sshfl [vmem:[#allocation1 + $0x8] sm:$0xff pattern:$0x75316420] }
   0xc   :  { %57 = vst [vmem:[#allocation1] ss:$2 sm:$0xff] %v905_v1 }
  0x11   :  { %v63_v6 = vld.sshfl [vmem:[#allocation1 + $0x18] sm:$0xff pattern:$0x75316420]  ;;  %v62_v7 = vld.sshfl [vmem:[#allocation1 + $0x10] sm:$0xff pattern:$0x75316420] }
  0x12   :  { %74 = vrot.lane.b32.xlu0 %v63_v6, %s849_s0  ;;  %72 = vrot.lane.b32.xlu2 %v62_v7, %s849_s0  ;;  %83 = vst [vmem:[#allocation1 + $0x10] ss:$2 sm:$0xff] %v900_v0 }
  0x13   :  { %v61_v8 = vld.sshfl [vmem:[#allocation1 + $0x8] sm:$0xff pattern:$0x75316420]  ;;  %v920_v9 = vld.sshfl [vmem:[#allocation1] sm:$0xff pattern:$0x75316420] }
  0x14   :  { %81 = vst [vmem:[#allocation1] ss:$2 sm:$0xff] %v905_v1 }
  0x19   :  { %v86_v10 = vld.sshfl [vmem:[#allocation1 + $0x10] sm:$0xff pattern:$0x75316420]  ;;  %v87_v11 = vld.sshfl [vmem:[#allocation1 + $0x18] sm:$0xff pattern:$0x75316420] }
  0x1a   :  { %96 = vrot.lane.b32.xlu1 %v86_v10, %s850_s29  ;;  %107 = vst [vmem:[#allocation1 + $0x10] ss:$2 sm:$0xff] %v900_v0  ;;  %70 = vrot.lane.b32.xlu2 %v61_v8, %s849_s0 }
  0x1b   :  { %v85_v12 = vld.sshfl [vmem:[#allocation1 + $0x8] sm:$0xff pattern:$0x75316420]  ;;  %v84_v13 = vld.sshfl [vmem:[#allocation1] sm:$0xff pattern:$0x75316420] }
  0x1c   :  { %94 = vrot.lane.b32.xlu0 %v85_v12, %s850_s29  ;;  %105 = vst [vmem:[#allocation1] ss:$2 sm:$0xff] %v905_v1 }
  0x21   :  { %v110_v14 = vld.sshfl [vmem:[#allocation1 + $0x10] sm:$0xff pattern:$0x75316420]  ;;  %v111_v15 = vld.sshfl [vmem:[#allocation1 + $0x18] sm:$0xff pattern:$0x75316420] }
  0x22   :  { %120 = vrot.lane.b32.xlu1 %v110_v14, %s851_s30  ;;  %98 = vrot.lane.b32.xlu2 %v87_v11, %s850_s29  ;;  %131 = vst [vmem:[#allocation1 + $0x10] ss:$2 sm:$0xff] %v900_v0  ;;  %v318_v14 = vld [vmem:[%s1517_s1 + $0x88] sm:$0xf] }
  0x23   :  { %v109_v16 = vld.sshfl [vmem:[#allocation1 + $0x8] sm:$0xff pattern:$0x75316420]  ;;  %v108_v17 = vld.sshfl [vmem:[#allocation1] sm:$0xff pattern:$0x75316420] }
  0x24   :  { %118 = vrot.lane.b32.xlu0 %v109_v16, %s851_s30  ;;  %129 = vst [vmem:[#allocation1] ss:$2 sm:$0xff] %v905_v1 }
  0x29   :  { %v135_v18 = vld.sshfl [vmem:[#allocation1 + $0x18] sm:$0xff pattern:$0x75316420]  ;;  %v134_v19 = vld.sshfl [vmem:[#allocation1 + $0x10] sm:$0xff pattern:$0x75316420] }
  0x2a   :  { %122 = vrot.lane.b32.xlu2 %v111_v15, %s851_s30  ;;  %155 = vst [vmem:[#allocation1 + $0x10] ss:$2 sm:$0xff] %v900_v0  ;;  %v856_v15 = vmov 0  }
  0x2b   :  { %v133_v20 = vld.sshfl [vmem:[#allocation1 + $0x8] sm:$0xff pattern:$0x75316420]  ;;  %v132_v21 = vld.sshfl [vmem:[#allocation1] sm:$0xff pattern:$0x75316420]  ;;  %846 = vset.pattern.permute.xlu2 %v856_v15  ;;  %847 = vset.pattern.permute.xlu0 %v856_v15 }
  0x2c   :  { %144 = vrot.lane.b32.xlu0 %v134_v19, %s852_s8  ;;  %142 = vrot.lane.b32.xlu1 %v133_v20, %s852_s8  ;;  %153 = vst [vmem:[#allocation1] ss:$2 sm:$0xff] %v905_v1 }
  0x31   :  { %v159_v22 = vld.sshfl [vmem:[#allocation1 + $0x18] sm:$0xff pattern:$0x75316420]  ;;  %v158_v23 = vld.sshfl [vmem:[#allocation1 + $0x10] sm:$0xff pattern:$0x75316420] }
  0x32   :  { %140 = vrot.lane.b32.xlu2 %v132_v21, %s852_s8  ;;  %179 = vst [vmem:[#allocation1 + $0x10] ss:$2 sm:$0xff] %v900_v0 }
  0x33   :  { %v156_v24 = vld.sshfl [vmem:[#allocation1] sm:$0xff pattern:$0x75316420]  ;;  %v157_v25 = vld.sshfl [vmem:[#allocation1 + $0x8] sm:$0xff pattern:$0x75316420] }
  0x34   :  { %170 = vrot.lane.b32.xlu1 %v159_v22, %s853_s9  ;;  %164 = vrot.lane.b32.xlu0 %v156_v24, %s853_s9  ;;  %177 = vst [vmem:[#allocation1] ss:$2 sm:$0xff] %v905_v1 }
  0x39   :  { %v183_v26 = vld.sshfl [vmem:[#allocation1 + $0x18] sm:$0xff pattern:$0x75316420]  ;;  %v182_v27 = vld.sshfl [vmem:[#allocation1 + $0x10] sm:$0xff pattern:$0x75316420] }
  0x3a   :  { %146 = vrot.lane.b32.xlu2 %v135_v18, %s852_s8  ;;  %203 = vst [vmem:[#allocation1 + $0x10] ss:$2 sm:$0xff] %v900_v0 }
  0x3b   :  { %v180_v28 = vld.sshfl [vmem:[#allocation1] sm:$0xff pattern:$0x75316420]  ;;  %v181_v29 = vld.sshfl [vmem:[#allocation1 + $0x8] sm:$0xff pattern:$0x75316420] }
  0x3c   :  { %168 = vrot.lane.b32.xlu1 %v158_v23, %s853_s9  ;;  %188 = vrot.lane.b32.xlu0 %v180_v28, %s854_s10  ;;  %201 = vst [vmem:[#allocation1] ss:$2 sm:$0xff] %v905_v1  ;;  %v313_v23 = vld [vmem:[%s1517_s1 + $0x60] sm:$0xff] }
  0x41   :  { %v206_v30 = vld.sshfl [vmem:[#allocation1 + $0x10] sm:$0xff pattern:$0x75316420]  ;;  %v207_v31 = vld.sshfl [vmem:[#allocation1 + $0x18] sm:$0xff pattern:$0x75316420] }
  0x42   :  { %166 = vrot.lane.b32.xlu2 %v157_v25, %s853_s9  ;;  %251 = vst [vmem:[#allocation1 + $0x10] ss:$2 sm:$0xff] %v900_v0  ;;  %v314_v25 = vld [vmem:[%s1517_s1 + $0x68] sm:$0xff] }
  0x43   :  { %v204_v32 = vld.sshfl [vmem:[#allocation1] sm:$0xff pattern:$0x75316420]  ;;  %v205_v33 = vld.sshfl [vmem:[#allocation1 + $0x8] sm:$0xff pattern:$0x75316420] }
  0x44   :  { %190 = vrot.lane.b32.xlu1 %v181_v29, %s854_s10  ;;  %194 = vrot.lane.b32.xlu0 %v183_v26, %s854_s10  ;;  %249 = vst [vmem:[#allocation1] ss:$2 sm:$0xff] %v905_v1 }
  0x49   :  { %v1000_v49 = vld.sshfl [vmem:[#allocation1 + $0x10] sm:$0xff pattern:$0x75316420]  ;;  %v1002_v50 = vld.sshfl [vmem:[#allocation1 + $0x18] sm:$0xff pattern:$0x75316420] }
  0x4a   :  { %192 = vrot.lane.b32.xlu2 %v182_v27, %s854_s10  ;;  %786 = vst [vmem:[#allocation1 + $0x10] ss:$2 sm:$0xff] %v900_v0 }
  0x4b   :  { %v980_v41 = vld.sshfl [vmem:[#allocation1] sm:$0xff pattern:$0x75316420]  ;;  %v982_v42 = vld.sshfl [vmem:[#allocation1 + $0x8] sm:$0xff pattern:$0x75316420] }
  0x4c   :  { %216 = vrot.lane.b32.xlu0 %v206_v30, %s855_s11  ;;  %212 = vrot.lane.b32.xlu1 %v204_v32, %s855_s11  ;;  %784 = vst [vmem:[#allocation1] ss:$2 sm:$0xff] %v905_v1  ;;  %v309_v32 = vld [vmem:[%s1517_s1 + $0x40] sm:$0xff] }
  0x52   :  { %214 = vrot.lane.b32.xlu2 %v205_v33, %s855_s11 }
  0x54   :  { %44 = vrot.lane.b32.xlu0 %v914_v5, %s848_s28  ;;  %218 = vrot.lane.b32.xlu1 %v207_v31, %s855_s11 }
  0x5a   :  { %68 = vrot.lane.b32.xlu2 %v920_v9, %s849_s0  ;;  %v341_v9 = vld [vmem:[%s1516_s4] sm:$0x3] }
  0x5c   :  { %92 = vrot.lane.b32.xlu0 %v84_v13, %s850_s29  ;;  %116 = vrot.lane.b32.xlu1 %v108_v17, %s851_s30  ;;  %v317_v13 = vld [vmem:[%s1517_s1 + $0x80] sm:$0xf] }
  0x62   :  { %344 = vperm.xlu2 %846, %v341_v9  }
  0x64   :  { %42 = vrot.lane.b32.xlu1 %v912_v4, %s848_s28 }
  0x6c   :  { %v73_v34 = vpop.permute.xlu2 %72 }
  0x74   :  { %v969_v37 = vpop.permute.xlu2 %70 }
  0x75   :  { %v974_v38 = vsel %vm76_vm0, %v969_v37, %v73_v34 }
  0x7c   :  { %v976_v39 = vpop.permute.xlu0 %46  ;;  %v978_v40 = vpop.permute.xlu2 %98 }
  0x7d   :  { %v985_v43 = vpop.permute.xlu1 %48 }
  0x84   :  { %v987_v44 = vpop.permute.xlu0 %74  ;;  %v994_v46 = vpop.permute.xlu2 %122 }
  0x85   :  { %v992_v45 = vsel %vm76_vm0, %v73_v34, %v987_v44  ;;  %v310_v34 = vld [vmem:[%s1517_s1 + $0x48] sm:$0xff] }
  0x8c   :  { %v996_v47 = vpop.permute.xlu1 %96  ;;  %v141_v52 = vpop.permute.xlu2 %140 }
  0x8d   :  { %v101_v15 = vsel %vm100_vm7, %v996_v47, %v978_v40 }
  0x8e   :  { %v998_v48 = vpop.permute.xlu0 %94 }
  0x94   :  { %v1005_v51 = vpop.permute.xlu1 %120  ;;  %v147_v56 = vpop.permute.xlu2 %146 }
  0x95   :  { %v152_v30 = vsel %vm148_vm2, %v147_v56, %v141_v52 }
  0x96   :  { %v1007_v53 = vpop.permute.xlu0 %118 }
  0x9c   :  { %v167_v59 = vpop.permute.xlu2 %166 }
  0x9e   :  { %v145_v54 = vpop.permute.xlu0 %144  ;;  %v143_v55 = vpop.permute.xlu1 %142 }
  0x9f   :  { %v150_v5 = vsel %vm148_vm2, %v143_v55, %v145_v54  ;;  %v151_v6 = vsel %vm148_vm2, %v141_v52, %v143_v55  ;;  %v149_v35 = vsel %vm148_vm2, %v145_v54, %v147_v56  ;;  %v125_v55 = vsel %vm124_vm5, %v1005_v51, %v994_v46 }
  0xa0   :  { %v264_v10 = vrot.slane %v151_v6, 4  ;;  %v265_v11 = vrot.slane %v150_v5, 4 }
  0xa2   :  { %v293_v31 = vsel %vm284_vm6, %v980_v41, %v264_v10  ;;  %v294_v33 = vsel %vm284_vm6, %v982_v42, %v265_v11  ;;  %v126_v42 = vsel %vm124_vm5, %v1007_v53, %v1005_v51 }
  0xa3   :  { %v329_v54 = vmul.f32 %v309_v32, %v293_v31  ;;  %v330_v56 = vmul.f32 %v310_v34, %v294_v33  ;;  %v243_v51 = vrot.slane %v126_v42, 4 }
  0xa4   :  { %v193_v62 = vpop.permute.xlu2 %192 }
  0xa6   :  { %v1009_v57 = vpop.permute.xlu1 %170  ;;  %v1011_v58 = vpop.permute.xlu0 %164 }
  0xa7   :  { %v175_v16 = vsel %vm172_vm3, %v1011_v58, %v167_v59  ;;  %v176_v5 = vsel %vm172_vm3, %v1009_v57, %v1011_v58  ;;  %v315_v58 = vld [vmem:[%s1517_s1 + $0x70] sm:$0xff] }
  0xac   :  { %v215_v12 = vpop.permute.xlu2 %214 }
  0xae   :  { %v1013_v60 = vpop.permute.xlu1 %168  ;;  %v189_v61 = vpop.permute.xlu0 %188 }
  0xaf   :  { %v174_v17 = vsel %vm172_vm3, %v167_v59, %v1013_v60  ;;  %v173_v6 = vsel %vm172_vm3, %v1013_v60, %v1009_v57  ;;  %v316_v57 = vld [vmem:[%s1517_s1 + $0x78] sm:$0xff]  ;;  %v232_v60 = vrot.slane %v992_v45, 4 }
  0xb4   :  { %v69_v34 = vpop.permute.xlu2 %68 }
  0xb6   :  { %v191_v63 = vpop.permute.xlu1 %190  ;;  %v195_v2 = vpop.permute.xlu0 %194 }
  0xb7   :  { %v198_v3 = vsel %vm196_vm1, %v191_v63, %v193_v62  ;;  %v199_v4 = vsel %vm196_vm1, %v189_v61, %v191_v63  ;;  %v197_v26 = vsel %vm196_vm1, %v193_v62, %v195_v2  ;;  %v200_v27 = vsel %vm196_vm1, %v195_v2, %v189_v61  ;;  %v319_v2 = vld [vmem:[%s1517_s1 + $0x90] sm:$0xf] }
  0xb8   :  { %v276_v7 = vrot.slane %v199_v4, 4  ;;  %v277_v8 = vrot.slane %v198_v3, 4  ;;  %v278_v59 = vrot.slane %v197_v26, 4  ;;  %v279_v61 = vrot.slane %v200_v27, 4  ;;  %v320_v3 = vld [vmem:[%s1517_s1 + $0x98] sm:$0xf] }
  0xb9   :  { %v267_v62 = vrot.slane %v152_v30, 4  ;;  %v266_v63 = vrot.slane %v149_v35, 4  ;;  %v244_v4 = vrot.slane %v125_v55, 4  ;;  %v305_v55 = vld [vmem:[%s1517_s1 + $0x20] sm:$0xff] }
  0xba   :  { %v297_v22 = vsel %vm284_vm6, %v175_v16, %v276_v7  ;;  %v298_v24 = vsel %vm284_vm6, %v174_v17, %v277_v8  ;;  %v299_v11 = vsel %vm284_vm6, %v173_v6, %v278_v59  ;;  %v102_v16 = vsel %vm100_vm7, %v998_v48, %v996_v47  ;;  %v302_v6 = vld [vmem:[%s1517_s1 + $0x8] sm:$0xff] }
  0xbb   :  { %v333_v52 = vmul.f32 %v313_v23, %v297_v22  ;;  %v334_v41 = vmul.f32 %v314_v25, %v298_v24  ;;  %v295_v17 = vsel %vm284_vm6, %v1000_v49, %v266_v63  ;;  %v296_v45 = vsel %vm284_vm6, %v1002_v50, %v267_v62  ;;  %v307_v23 = vld [vmem:[%s1517_s1 + $0x30] sm:$0xff]  ;;  %v308_v25 = vld [vmem:[%s1517_s1 + $0x38] sm:$0xff] }
  0xbc   :  { %v335_v47 = vmul.f32 %v315_v58, %v299_v11  ;;  %v53_v50 = vsel %vm52_vm8, %v976_v39, %v985_v43  ;;  %v291_v22 = vsel %vm284_vm6, %v102_v16, %v243_v51  ;;  %v292_v24 = vsel %vm284_vm6, %v101_v15, %v244_v4 }
  0xbd   :  { %v288_v27 = vsel %vm284_vm6, %v53_v50, %v232_v60  ;;  %v327_v32 = vmul.f32 %v307_v23, %v291_v22  ;;  %v328_v33 = vmul.f32 %v308_v25, %v292_v24  ;;  %v79_v62 = vsel %vm76_vm0, %v69_v34, %v969_v37 }
  0xbe   :  { %v217_v18 = vpop.permute.xlu0 %216  ;;  %v213_v19 = vpop.permute.xlu1 %212  ;;  %v230_v37 = vrot.slane %v79_v62, 4 }
  0xbf   :  { %v222_v20 = vsel %vm220_vm4, %v215_v12, %v217_v18  ;;  %v223_v21 = vsel %vm220_vm4, %v213_v19, %v215_v12  ;;  %v300_v12 = vsel %vm284_vm6, %v176_v5, %v279_v61  ;;  %v301_v5 = vld [vmem:[%s1517_s1] sm:$0xff] }
  0xc0   :  { %v337_v28 = vmul.f32 %v317_v13, %v223_v21  ;;  %v338_v29 = vmul.f32 %v318_v14, %v222_v20  ;;  %v336_v49 = vmul.f32 %v316_v57, %v300_v12  ;;  %v231_v21 = vrot.slane %v974_v38, 4  ;;  %v345_v12 = vpop.permute.xlu2 %344 }
  0xc2   :  { %821 = vmatpush.msk.msra.mxu0 %vm284_vm6, %v337_v28  ;;  %823 = vmatpush.msk.msra.mxu1 %vm284_vm6, %v338_v29  ;;  %v303_v29 = vld [vmem:[%s1517_s1 + $0x10] sm:$0xff] }
  0xc4   :  { %375 = vmatpush.msra.mxu0 %v333_v52  ;;  %395 = vmatpush.msra.mxu1 %v334_v41 }
  0xc6   :  { %v1098_v7 = vpop.permute.xlu0 %44  ;;  %v219_v8 = vpop.permute.xlu1 %218  ;;  %376 = vmatpush.msra.mxu0 %v329_v54  ;;  %396 = vmatpush.msra.mxu1 %v330_v56  ;;  %v306_v54 = vld [vmem:[%s1517_s1 + $0x28] sm:$0xff] }
  0xc7   :  { %v221_v9 = vsel %vm220_vm4, %v217_v18, %v219_v8  ;;  %v224_v10 = vsel %vm220_vm4, %v219_v8, %v213_v19  ;;  %v311_v18 = vld [vmem:[%s1517_s1 + $0x50] sm:$0xff]  ;;  %v312_v19 = vld [vmem:[%s1517_s1 + $0x58] sm:$0xff]  ;;  %v54_v20 = vsel %vm52_vm8, %v1098_v7, %v976_v39 }
  0xc8   :  { %v339_v13 = vmul.f32 %v319_v2, %v221_v9  ;;  %v340_v14 = vmul.f32 %v320_v3, %v224_v10  ;;  %v331_v38 = vmul.f32 %v311_v18, %v295_v17  ;;  %v332_v26 = vmul.f32 %v312_v19, %v296_v45  ;;  %v304_v39 = vld [vmem:[%s1517_s1 + $0x18] sm:$0xff] }
  0xc9   :  { %v287_v28 = vsel %vm284_vm6, %v54_v20, %v231_v21  ;;  %v324_v41 = vmul.f32 %v304_v39, %v288_v27  ;;  %v80_v3 = vsel %vm76_vm0, %v987_v44, %v69_v34  ;;  %v666_v20 = vld [vmem:[%s1519_s6] sm:$0xf] }
  0xca   :  { %825 = vmatpush.msk.msra.mxu2 %vm284_vm6, %v339_v13  ;;  %827 = vmatpush.msk.msra.mxu3 %vm284_vm6, %v340_v14  ;;  %v323_v61 = vmul.f32 %v303_v29, %v287_v28 }
  0xcc   :  { %415 = vmatpush.msra.mxu2 %v335_v47  ;;  %435 = vmatpush.msra.mxu3 %v336_v49 }
  0xce   :  { %v93_v30 = vpop.permute.xlu0 %92  ;;  %416 = vmatpush.msra.mxu2 %v331_v38  ;;  %436 = vmatpush.msra.mxu3 %v332_v26  ;;  %v117_v31 = vpop.permute.xlu1 %116 }
  0xcf   :  { %v127_v35 = vsel %vm124_vm5, %v117_v31, %v1007_v53  ;;  %v128_v52 = vsel %vm124_vm5, %v994_v46, %v117_v31  ;;  %v28_v53 = vld [vmem:[%s1518_s3] sm:$0x3]  ;;  %v103_v46 = vsel %vm100_vm7, %v93_v30, %v998_v48  ;;  %v104_v56 = vsel %vm100_vm7, %v978_v40, %v93_v30 }
  0xd0   :  { %v241_v42 = vrot.slane %v128_v52, 4  ;;  %v242_v59 = vrot.slane %v127_v35, 4  ;;  %417 = vmatpush.msra.mxu2 %v327_v32  ;;  %437 = vmatpush.msra.mxu3 %v328_v33  ;;  %v229_v40 = vrot.slane %v80_v3, 4 }
  0xd2   :  { %418 = vmatpush.msra.mxu2 %v323_v61  ;;  %438 = vmatpush.msra.mxu3 %v324_v41  ;;  %v289_v63 = vsel %vm284_vm6, %v104_v56, %v241_v42  ;;  %v290_v2 = vsel %vm284_vm6, %v103_v46, %v242_v59 }
  0xd3   :  { %v325_v4 = vmul.f32 %v305_v55, %v289_v63  ;;  %v326_v48 = vmul.f32 %v306_v54, %v290_v2  ;;  %826 = vmatmul.msk.f32.vlgmr.msra.gmra.mxu2 %vm347_vm9, %v28_v53  ;;  %828 = vmatmul.msk.f32.vlgmr.msra.gmra.mxu3 %vm347_vm9, %v28_v53  ;;  %v650_v63 = vld [vmem:[%s1520_s2 + $0x40] sm:$0x3] }
  0xd5   :  { %377 = vmatpush.msra.mxu0 %v325_v4  ;;  %397 = vmatpush.msra.mxu1 %v326_v48 }
  0xd6   :  { %v43_v51 = vpop.permute.xlu1 %42 }
  0xd7   :  { %v55_v44 = vsel %vm52_vm8, %v43_v51, %v1098_v7  ;;  %v56_v8 = vsel %vm52_vm8, %v985_v43, %v43_v51  ;;  %v646_v51 = vld [vmem:[%s1520_s2 + $0x20] sm:$0xff] }
  0xd8   :  { %v285_v9 = vsel %vm284_vm6, %v56_v8, %v229_v40  ;;  %v286_v10 = vsel %vm284_vm6, %v55_v44, %v230_v37 }
  0xd9   :  { %v321_v11 = vmul.f32 %v301_v5, %v285_v9  ;;  %v322_v58 = vmul.f32 %v302_v6, %v286_v10 }
  0xdb   :  { %378 = vmatpush.msra.mxu0 %v321_v11  ;;  %398 = vmatpush.msra.mxu1 %v322_v58 }
  0xdc   :  { %822 = vmatmul.msk.f32.vlgmr.msra.gmra.mxu0 %vm347_vm9, %v28_v53  ;;  %824 = vmatmul.msk.f32.vlgmr.msra.gmra.mxu1 %vm347_vm9, %v28_v53 }
 0x156   :  { %v440_v15 = vpop.f32.mrf.mxu3  ;;  %v420_v18 = vpop.f32.mrf.mxu2 }
 0x157   :  { %v441_v16 = vadd.f32 %v440_v15, %v345_v12  ;;  %v421_v45 = vadd.f32 %v420_v18, %v345_v12 }
 0x159   :  { %v380_v57 = vpop.f32.mrf.mxu0  ;;  %v400_v13 = vpop.f32.mrf.mxu1  ;;  %v1234_v17 = vmax.f32 %v441_v16, 0.0  ;;  %v1242_v19 = vmax.f32 %v421_v45, 0.0 }
 0x15a   :  { %v381_v60 = vadd.f32 %v380_v57, %v345_v12  ;;  %v401_v43 = vadd.f32 %v400_v13, %v345_v12 }
 0x15c   :  { %v1206_v7 = vmax.f32 %v381_v60, 0.0  ;;  %v1214_v14 = vmax.f32 %v401_v43, 0.0 }
 0x15e   :  { %520 = vrot.lane.b32.xlu1 %v1206_v7, %s854_s10  ;;  %508 = vrot.lane.b32.xlu2 %v1206_v7, %s853_s9 }
 0x15f   :  { %496 = vrot.lane.b32.xlu0 %v1206_v7, %s852_s8 }
 0x166   :  { %462 = vrot.lane.b32.xlu1 %v1214_v14, %s849_s0  ;;  %474 = vrot.lane.b32.xlu2 %v1214_v14, %s850_s29 }
 0x167   :  { %532 = vrot.lane.b32.xlu0 %v1206_v7, %s855_s11 }
 0x16e   :  { %450 = vrot.lane.b32.xlu1 %v1214_v14, %s848_s28  ;;  %486 = vrot.lane.b32.xlu2 %v1214_v14, %s851_s30 }
 0x16f   :  { %498 = vrot.lane.b32.xlu0 %v1214_v14, %s852_s8 }
 0x176   :  { %510 = vrot.lane.b32.xlu1 %v1214_v14, %s853_s9  ;;  %460 = vrot.lane.b32.xlu2 %v1206_v7, %s849_s0 }
 0x177   :  { %522 = vrot.lane.b32.xlu0 %v1214_v14, %s854_s10 }
 0x17e   :  { %472 = vrot.lane.b32.xlu1 %v1206_v7, %s850_s29  ;;  %466 = vrot.lane.b32.xlu2 %v1234_v17, %s849_s0 }
 0x17f   :  { %514 = vrot.lane.b32.xlu0 %v1234_v17, %s853_s9 }
 0x186   :  { %502 = vrot.lane.b32.xlu1 %v1234_v17, %s852_s8  ;;  %526 = vrot.lane.b32.xlu2 %v1234_v17, %s854_s10 }
 0x187   :  { %500 = vrot.lane.b32.xlu0 %v1242_v19, %s852_s8 }
 0x18e   :  { %464 = vrot.lane.b32.xlu1 %v1242_v19, %s849_s0  ;;  %512 = vrot.lane.b32.xlu2 %v1242_v19, %s853_s9 }
 0x18f   :  { %476 = vrot.lane.b32.xlu0 %v1242_v19, %s850_s29 }
 0x196   :  { %478 = vrot.lane.b32.xlu1 %v1234_v17, %s850_s29  ;;  %452 = vrot.lane.b32.xlu2 %v1242_v19, %s848_s28 }
 0x197   :  { %454 = vrot.lane.b32.xlu0 %v1234_v17, %s848_s28 }
 0x19e   :  { %538 = vrot.lane.b32.xlu1 %v1234_v17, %s855_s11  ;;  %488 = vrot.lane.b32.xlu2 %v1242_v19, %s851_s30 }
 0x19f   :  { %490 = vrot.lane.b32.xlu0 %v1234_v17, %s851_s30 }
 0x1a6   :  { %524 = vrot.lane.b32.xlu1 %v1242_v19, %s854_s10  ;;  %534 = vrot.lane.b32.xlu2 %v1214_v14, %s855_s11 }
 0x1a7   :  { %536 = vrot.lane.b32.xlu0 %v1242_v19, %s855_s11 }
 0x1ae   :  { %484 = vrot.lane.b32.xlu1 %v1206_v7, %s851_s30  ;;  %669 = vperm.xlu2 %846, %v666_v20  }
 0x1af   :  { %448 = vrot.lane.b32.xlu0 %v1206_v7, %s848_s28 }
 0x1b8   :  { %v509_v47 = vpop.permute.xlu2 %508 }
 0x1c0   :  { %v1281_v49 = vpop.permute.xlu2 %474 }
 0x1c8   :  { %v1283_v21 = vpop.permute.xlu2 %486 }
 0x1d0   :  { %v521_v50 = vpop.permute.xlu1 %520  ;;  %v461_v22 = vpop.permute.xlu2 %460 }
 0x1d1   :  { %v497_v23 = vpop.permute.xlu0 %496 }
 0x1d8   :  { %v463_v24 = vpop.permute.xlu1 %462  ;;  %v467_v25 = vpop.permute.xlu2 %466 }
 0x1d9   :  { %v1287_v38 = vsel %vm76_vm0, %v461_v22, %v463_v24  ;;  %v1291_v26 = vsel %vm76_vm0, %v467_v25, %v461_v22  ;;  %v1293_v27 = vpop.permute.xlu0 %532 }
 0x1e0   :  { %v1295_v39 = vpop.permute.xlu1 %450  ;;  %v1297_v28 = vpop.permute.xlu2 %526 }
 0x1e1   :  { %v499_v29 = vpop.permute.xlu0 %498  ;;  %v531_v15 = vsel %vm196_vm1, %v1297_v28, %v521_v50 }
 0x1e2   :  { %v506_v52 = vsel %vm148_vm2, %v497_v23, %v499_v29  ;;  %v611_v22 = vrot.slane %v531_v15, 2 }
 0x1e3   :  { %v584_v59 = vrot.slane %v506_v52, 6 }
 0x1e5   :  { %v630_v46 = vsel %vm616_vm10, %v1206_v7, %v584_v59 }
 0x1e8   :  { %v1299_v30 = vpop.permute.xlu1 %510  ;;  %v1301_v31 = vpop.permute.xlu2 %512 }
 0x1e9   :  { %v1303_v32 = vpop.permute.xlu0 %522  ;;  %v518_v41 = vsel %vm172_vm3, %v509_v47, %v1299_v30 }
 0x1ea   :  { %v596_v54 = vrot.slane %v518_v41, 4  ;;  %v530_v53 = vsel %vm196_vm1, %v521_v50, %v1303_v32  ;;  %v653_v50 = vld [vmem:[%s1520_s2 + $0x58] sm:$0x3] }
 0x1eb   :  { %v608_v56 = vrot.slane %v530_v53, 2  ;;  %v649_v53 = vld [vmem:[%s1520_s2 + $0x38] sm:$0xff] }
 0x1ec   :  { %v634_v62 = vsel %vm284_vm6, %v630_v46, %v596_v54  ;;  %v645_v46 = vld [vmem:[%s1520_s2 + $0x18] sm:$0xff] }
 0x1ed   :  { %v638_v37 = vsel %vm625_vm11, %v634_v62, %v608_v56 }
 0x1ee   :  { %v658_v58 = vmul.f32 %v646_v51, %v638_v37  ;;  %v1413_v51 = vld [vmem:[%s1521_s5] sm:$0xf] }
 0x1f0   :  { %v1305_v33 = vpop.permute.xlu1 %472  ;;  %v453_v34 = vpop.permute.xlu2 %452 }
 0x1f1   :  { %v1307_v35 = vpop.permute.xlu0 %514  ;;  %v457_v8 = vsel %vm52_vm8, %v1295_v39, %v453_v34 }
 0x1f2   :  { %v519_v7 = vsel %vm172_vm3, %v1307_v35, %v509_v47 }
 0x1f3   :  { %v599_v16 = vrot.slane %v519_v7, 4 }
 0x1f8   :  { %v503_v55 = vpop.permute.xlu1 %502  ;;  %v1314_v42 = vpop.permute.xlu2 %488 }
 0x1f9   :  { %v501_v61 = vpop.permute.xlu0 %500  ;;  %v507_v10 = vsel %vm148_vm2, %v503_v55, %v497_v23 }
 0x1fa   :  { %v587_v57 = vrot.slane %v507_v10, 6  ;;  %v504_v23 = vsel %vm148_vm2, %v501_v61, %v503_v55  ;;  %v505_v52 = vsel %vm148_vm2, %v499_v29, %v501_v61 }
 0x1fb   :  { %v586_v56 = vrot.slane %v504_v23, 6  ;;  %v549_v23 = vrot.slane %v1287_v38, 6 }
 0x1fc   :  { %v633_v43 = vsel %vm616_vm10, %v1234_v17, %v587_v57 }
 0x1fd   :  { %v637_v47 = vsel %vm284_vm6, %v633_v43, %v599_v16 }
 0x1fe   :  { %v641_v54 = vsel %vm625_vm11, %v637_v47, %v611_v22 }
 0x1ff   :  { %v661_v62 = vmul.f32 %v649_v53, %v641_v54 }
 0x200   :  { %v465_v2 = vpop.permute.xlu1 %464  ;;  %v1325_v3 = vpop.permute.xlu2 %534 }
 0x201   :  { %v469_v4 = vsel %vm76_vm0, %v463_v24, %v465_v2  ;;  %v542_v48 = vsel %vm220_vm4, %v1293_v27, %v1325_v3  ;;  %v477_v40 = vpop.permute.xlu0 %476  ;;  %v468_v18 = vsel %vm76_vm0, %v465_v2, %v467_v25  ;;  %v517_v2 = vsel %vm172_vm3, %v1299_v30, %v1301_v31 }
 0x202   :  { %v550_v5 = vrot.slane %v469_v4, 6  ;;  %v662_v6 = vmul.f32 %v650_v63, %v542_v48  ;;  %v481_v44 = vsel %vm100_vm7, %v1281_v49, %v477_v40  ;;  %v551_v17 = vrot.slane %v468_v18, 6 }
 0x203   :  { %v562_v9 = vrot.slane %v481_v44, 4  ;;  %v516_v48 = vsel %vm172_vm3, %v1301_v31, %v1307_v35  ;;  %v597_v30 = vrot.slane %v517_v2, 4  ;;  %v632_v31 = vsel %vm616_vm10, %v1242_v19, %v586_v56 }
 0x204   :  { %v619_v11 = vsel %vm616_vm10, %v457_v8, %v550_v5  ;;  %829 = vmatpush.msk.msrb.mxu0 %vm616_vm10, %v662_v6  ;;  %v652_v6 = vld [vmem:[%s1520_s2 + $0x50] sm:$0x3]  ;;  %v598_v44 = vrot.slane %v516_v48, 4 }
 0x205   :  { %v1348_v12 = vsel %vm284_vm6, %v619_v11, %v562_v9 }
 0x206   :  { %702 = vmatpush.msrb.mxu0 %v658_v58  ;;  %v636_v16 = vsel %vm284_vm6, %v632_v31, %v598_v44 }
 0x208   :  { %v1350_v60 = vpop.permute.xlu1 %478  ;;  %v670_v56 = vpop.permute.xlu2 %669 }
 0x209   :  { %v1355_v13 = vpop.permute.xlu0 %454  ;;  %v480_v45 = vsel %vm100_vm7, %v477_v40, %v1350_v60  ;;  %v493_v40 = vsel %vm124_vm5, %v1283_v21, %v1314_v42 }
 0x20a   :  { %v456_v20 = vsel %vm52_vm8, %v453_v34, %v1355_v13  ;;  %v563_v24 = vrot.slane %v480_v45, 4  ;;  %v574_v8 = vrot.slane %v493_v40, 2 }
 0x20b   :  { %v620_v41 = vsel %vm616_vm10, %v456_v20, %v551_v17  ;;  %v644_v20 = vld [vmem:[%s1520_s2 + $0x10] sm:$0xff]  ;;  %v482_v17 = vsel %vm100_vm7, %v1305_v33, %v1281_v49 }
 0x20c   :  { %v624_v63 = vsel %vm284_vm6, %v620_v41, %v563_v24  ;;  %v548_v24 = vrot.slane %v1291_v26, 6 }
 0x210   :  { %v539_v25 = vpop.permute.xlu1 %538 }
 0x211   :  { %v543_v34 = vsel %vm220_vm4, %v539_v25, %v1293_v27  ;;  %v1382_v59 = vpop.permute.xlu0 %490  ;;  %v585_v27 = vrot.slane %v505_v52, 6  ;;  %v561_v52 = vrot.slane %v482_v17, 4 }
 0x212   :  { %v665_v55 = vmul.f32 %v653_v50, %v543_v34  ;;  %v492_v29 = vsel %vm124_vm5, %v1314_v42, %v1382_v59  ;;  %v651_v42 = vld [vmem:[%s1520_s2 + $0x48] sm:$0x3] }
 0x213   :  { %v575_v61 = vrot.slane %v492_v29, 2  ;;  %v631_v5 = vsel %vm616_vm10, %v1214_v14, %v585_v27 }
 0x214   :  { %835 = vmatpush.msk.msrb.mxu3 %vm616_vm10, %v665_v55  ;;  %v635_v15 = vsel %vm284_vm6, %v631_v5, %v597_v30  ;;  %v643_v55 = vld [vmem:[%s1520_s2 + $0x8] sm:$0xff] }
 0x215   :  { %v629_v4 = vsel %vm625_vm11, %v624_v63, %v575_v61 }
 0x216   :  { %762 = vmatpush.msrb.mxu3 %v661_v62  ;;  %v657_v37 = vmul.f32 %v645_v46, %v629_v4 }
 0x218   :  { %v525_v35 = vpop.permute.xlu1 %524  ;;  %763 = vmatpush.msrb.mxu3 %v657_v37 }
 0x219   :  { %v528_v9 = vsel %vm196_vm1, %v525_v35, %v1297_v28  ;;  %v529_v14 = vsel %vm196_vm1, %v1303_v32, %v525_v35  ;;  %v537_v19 = vpop.permute.xlu0 %536  ;;  %836 = vmatmul.msk.f32.vlgmr.msrb.gmra.mxu3 %vm672_vm12, %v1413_v51  ;;  %v647_v28 = vld [vmem:[%s1520_s2 + $0x28] sm:$0xff]  ;;  %v648_v32 = vld [vmem:[%s1520_s2 + $0x30] sm:$0xff] }
 0x21a   :  { %v609_v10 = vrot.slane %v529_v14, 2  ;;  %v610_v11 = vrot.slane %v528_v9, 2  ;;  %v540_v58 = vsel %vm220_vm4, %v537_v19, %v539_v25  ;;  %v541_v57 = vsel %vm220_vm4, %v1325_v3, %v537_v19  ;;  %v787_v14 = vld.sshfl [vmem:[#allocation1] sm:$0xff pattern:$0x75316420] }
 0x21b   :  { %v663_v7 = vmul.f32 %v651_v42, %v541_v57  ;;  %v664_v43 = vmul.f32 %v652_v6, %v540_v58  ;;  %v628_v3 = vsel %vm625_vm11, %v1348_v12, %v574_v8  ;;  %v483_v12 = vsel %vm100_vm7, %v1350_v60, %v1305_v33  ;;  %v789_v42 = vld.sshfl [vmem:[#allocation1 + $0x10] sm:$0xff pattern:$0x75316420]  ;;  %v790_v6 = vld.sshfl [vmem:[#allocation1 + $0x18] sm:$0xff pattern:$0x75316420] }
 0x21c   :  { %v639_v18 = vsel %vm625_vm11, %v635_v15, %v609_v10  ;;  %v640_v45 = vsel %vm625_vm11, %v636_v16, %v610_v11  ;;  %v656_v50 = vmul.f32 %v644_v20, %v628_v3  ;;  %v560_v41 = vrot.slane %v483_v12, 4  ;;  %v788_v19 = vld.sshfl [vmem:[#allocation1 + $0x8] sm:$0xff pattern:$0x75316420] }
 0x21d   :  { %831 = vmatpush.msk.msrb.mxu1 %vm616_vm10, %v663_v7  ;;  %833 = vmatpush.msk.msrb.mxu2 %vm616_vm10, %v664_v43  ;;  %v659_v47 = vmul.f32 %v647_v28, %v639_v18  ;;  %v660_v22 = vmul.f32 %v648_v32, %v640_v45 }
 0x21f   :  { %722 = vmatpush.msrb.mxu1 %v659_v47  ;;  %742 = vmatpush.msrb.mxu2 %v660_v22 }
 0x220   :  { %v485_v25 = vpop.permute.xlu1 %484 }
 0x221   :  { %v494_v34 = vsel %vm124_vm5, %v485_v25, %v1283_v21  ;;  %v495_v49 = vsel %vm124_vm5, %v1382_v59, %v485_v25  ;;  %v449_v54 = vpop.permute.xlu0 %448  ;;  %743 = vmatpush.msrb.mxu2 %v656_v50  ;;  %v642_v59 = vld [vmem:[%s1520_s2] sm:$0xff] }
 0x222   :  { %v572_v33 = vrot.slane %v495_v49, 2  ;;  %v573_v60 = vrot.slane %v494_v34, 2  ;;  %v458_v38 = vsel %vm52_vm8, %v449_v54, %v1295_v39  ;;  %v459_v26 = vsel %vm52_vm8, %v1355_v13, %v449_v54  ;;  %834 = vmatmul.msk.f32.vlgmr.msrb.gmra.mxu2 %vm672_vm12, %v1413_v51 }
 0x223   :  { %v617_v21 = vsel %vm616_vm10, %v459_v26, %v548_v24  ;;  %v618_v53 = vsel %vm616_vm10, %v458_v38, %v549_v23 }
 0x224   :  { %v621_v39 = vsel %vm284_vm6, %v617_v21, %v560_v41  ;;  %v622_v36 = vsel %vm284_vm6, %v618_v53, %v561_v52 }
 0x225   :  { %v626_v13 = vsel %vm625_vm11, %v621_v39, %v572_v33  ;;  %v627_v29 = vsel %vm625_vm11, %v622_v36, %v573_v60 }
 0x226   :  { %v654_v61 = vmul.f32 %v642_v59, %v626_v13  ;;  %v655_v46 = vmul.f32 %v643_v55, %v627_v29 }
 0x228   :  { %703 = vmatpush.msrb.mxu0 %v654_v61  ;;  %723 = vmatpush.msrb.mxu1 %v655_v46 }
 0x229   :  { %830 = vmatmul.msk.f32.vlgmr.msrb.gmra.mxu0 %vm672_vm12, %v1413_v51  ;;  %832 = vmatmul.msk.f32.vlgmr.msrb.gmra.mxu1 %vm672_vm12, %v1413_v51 }
 0x29c   :  { %v765_v27 = vpop.f32.mrf.mxu3 }
 0x29d   :  { %v766_v62 = vadd.f32 %v765_v27, %v670_v56 }
 0x29f   :  { %v771_v63 = vmax.f32 %v766_v62, 0.0 }
 0x2a1   :  { %v777_v5 = vrot.slane %v771_v63, 4 }
 0x2a5   :  { %v745_v2 = vpop.f32.mrf.mxu2 }
 0x2a6   :  { %v705_v4 = vpop.f32.mrf.mxu0  ;;  %v725_v48 = vpop.f32.mrf.mxu1  ;;  %v746_v40 = vadd.f32 %v745_v2, %v670_v56 }
 0x2a7   :  { %v706_v37 = vadd.f32 %v705_v4, %v670_v56  ;;  %v726_v30 = vadd.f32 %v725_v48, %v670_v56 }
 0x2a8   :  { %v770_v31 = vmax.f32 %v746_v40, 0.0 }
 0x2a9   :  { %v769_v35 = vmax.f32 %v726_v30, 0.0  ;;  %v768_v8 = vmax.f32 %v706_v37, 0.0 }
 0x2aa   :  { %v779_v44 = vsel %vm284_vm6, %v770_v31, %v777_v5 }
 0x2ab   :  { %v776_v9 = vrot.slane %v769_v35, 4  ;;  %v783_v51 = vadd.f32 %v779_v44, %v900_v0 }
 0x2ad   :  { %v778_v10 = vsel %vm284_vm6, %v768_v8, %v776_v9  ;;  %800 = vst [vmem:[#allocation1 + $0x11] ss:$2 sm:$0xff] %v783_v51 }
 0x2ae   :  { %v782_v11 = vadd.f32 %v778_v10, %v905_v1 }
 0x2b0   :  { %798 = vst [vmem:[#allocation1 + $0x1] ss:$2 sm:$0xff] %v782_v11 }
 0x2b4   :  { %v803_v58 = vld.sshfl [vmem:[#allocation1 + $0x10] sm:$0xff pattern:$0x75316420]  ;;  %v804_v57 = vld.sshfl [vmem:[#allocation1 + $0x18] sm:$0xff pattern:$0x75316420] }
 0x2b5   :  { %v811_v28 = vsel %vm284_vm6, %v789_v42, %v803_v58  ;;  %v812_v32 = vsel %vm284_vm6, %v790_v6, %v804_v57 }
 0x2b6   :  { %815 = vst [vmem:[%s1522_s7 + $0x10] sm:$0xff] %v811_v28 }
 0x2b7   :  { %v801_v7 = vld.sshfl [vmem:[#allocation1] sm:$0xff pattern:$0x75316420]  ;;  %v802_v0 = vld.sshfl [vmem:[#allocation1 + $0x8] sm:$0xff pattern:$0x75316420] }
 0x2b8   :  { %v809_v43 = vsel %vm284_vm6, %v787_v14, %v801_v7  ;;  %v810_v15 = vsel %vm284_vm6, %v788_v19, %v802_v0  ;;  %816 = vst [vmem:[%s1522_s7 + $0x18] sm:$0xff] %v812_v32 }
 0x2b9   :  { %813 = vst [vmem:[%s1522_s7] sm:$0xff] %v809_v43 }
 0x2ba   :  { %814 = vst [vmem:[%s1522_s7 + $0x8] sm:$0xff] %v810_v15 }

</bundles_post_ra>
